<compile_context>
chip_gen: v7x
topology: tpu7x:2x2x1
jax: 0.10.0
libtpu: 0.0.40
codegen_flags: <defaults>
</compile_context>

<pallas_src>
import functools

import jax
import jax.numpy as jnp
from jax.experimental import pallas as pl
from jax.experimental.pallas import tpu as pltpu

F_OUT1 = 20    # linear_1: 2*F_in -> 20
F_OUT2 = 10    # linear_2: 2*20   -> 10
F_OUT3 = 7     # head    : 10     -> 7
LANE = 128
H1_PAD = 128   # depth-0 output padded to lane-dense 128 columns (cols >= 20 are zero)
H2_PAD = 128   # depth-1 hidden padded to lane-dense 128 columns (cols >= 10 are zero)
O_PAD = 128    # head output padded to lane-dense 128 columns (cols >= 7 are zero)


# -----------------------------------------------------------------------------
# Pallas kernels
# -----------------------------------------------------------------------------
def _sage0_kernel(h_ref, hn_ref, w_self_ref, w_neigh_ref, b_ref, o_ref, *, f_out):
    """Depth-0 SAGE step: concat([x, x_neigh]) @ W1 + b1 in split form, sigmoid, L2-norm."""
    z = (jnp.dot(h_ref[...], w_self_ref[...], preferred_element_type=jnp.float32)
         + jnp.dot(hn_ref[...], w_neigh_ref[...], preferred_element_type=jnp.float32)
         + b_ref[...])                                      # [tile_n, 128] f32
    z = 1.0 / (1.0 + jnp.exp(-z))                           # sigmoid (exp on EUP)
    lane = jax.lax.broadcasted_iota(jnp.int32, z.shape, 1)
    z = jnp.where(lane < f_out, z, 0.0)                     # zero padded output lanes
    inv_norm = jax.lax.rsqrt(jnp.sum(z * z, axis=-1, keepdims=True))
    o_ref[...] = (z * inv_norm).astype(o_ref.dtype)         # h_v / ||h_v||_2, stored bf16


def _sage1_head_kernel(h_ref, hn_ref, w_self_ref, w_neigh_ref, b_ref,
                       drop_ref, w3_ref, b3_ref, o_ref, *, f_out):
    """Depth-1 SAGE step fused with the head: sigmoid/L2-norm -> relu -> dropout -> Linear."""
    z = (jnp.dot(h_ref[...], w_self_ref[...], preferred_element_type=jnp.float32)
         + jnp.dot(hn_ref[...], w_neigh_ref[...], preferred_element_type=jnp.float32)
         + b_ref[...])                                      # [tile_n, 128] f32
    z = 1.0 / (1.0 + jnp.exp(-z))                           # sigmoid
    lane = jax.lax.broadcasted_iota(jnp.int32, z.shape, 1)
    z = jnp.where(lane < f_out, z, 0.0)                     # mask BEFORE norm (sigmoid(0)=0.5)
    inv_norm = jax.lax.rsqrt(jnp.sum(z * z, axis=-1, keepdims=True))
    z = z * inv_norm                                        # h_v / ||h_v||_2
    h = jnp.maximum(z, 0.0) * drop_ref[...]                 # relu -> dropout (mask in {0, 2})
    o_ref[...] = (jnp.dot(h, w3_ref[...], preferred_element_type=jnp.float32)
                  + b3_ref[...])                            # [tile_n, 128], cols >= 7 are zero


# -----------------------------------------------------------------------------
# Wrappers / glue
# -----------------------------------------------------------------------------
def _round_up(x, m):
    return -(-x // m) * m


def _pad2d(a, rows, cols):
    return jnp.pad(a, ((0, rows - a.shape[0]), (0, cols - a.shape[1])))


def _compiler_params():
    return pltpu.CompilerParams(
        dimension_semantics=("parallel",),          # shard node tiles across TensorCores
        vmem_limit_bytes=48 * 1024 * 1024,          # < v7x's 64 MiB physical VMEM per TC
    )


def _gather_max(h, idx):
    """Element-wise max over K sampled-neighbor rows.

    Expressed as a fold of K row-gathers so XLA fuses each gather into the element-wise
    maximum and never materializes a [N, K, F] intermediate.  Note: the max is taken in
    h's dtype (bf16 for both depths), a tiny deviation from an all-f32 reference.
    """
    out = h[idx[:, 0], :]
    for k in range(1, idx.shape[1]):
        out = jnp.maximum(out, h[idx[:, k], :])
    return out


def init_params(key, in_features):
    """Deterministic synthetic params; nn.Linear-style U(-1/sqrt(fan_in), 1/sqrt(fan_in))."""
    def linear(k, fan_in, fan_out):
        kw, kb = jax.random.split(k)
        bound = 1.0 / jnp.sqrt(jnp.float32(fan_in))
        w = jax.random.uniform(kw, (fan_in, fan_out), jnp.float32, -bound, bound)
        b = jax.random.uniform(kb, (1, fan_out), jnp.float32, -bound, bound)
        return w, b

    k1, k2, k3 = jax.random.split(key, 3)
    w1, b1 = linear(k1, 2 * in_features, F_OUT1)    # linear_1: 2*F_in -> 20
    w2, b2 = linear(k2, 2 * F_OUT1, F_OUT2)         # linear_2: 40 -> 10
    w3, b3 = linear(k3, F_OUT2, F_OUT3)             # head    : 10 -> 7
    return dict(
        w1_self=w1[:in_features], w1_neigh=w1[in_features:], b1=b1,
        w2_self=w2[:F_OUT1], w2_neigh=w2[F_OUT1:], b2=b2,
        w3=w3, b3=b3,
    )


def graphsage_forward(params, x, neigh_idx_d0, neigh_idx_d1, dropout_key, *, tile_n=1024):
    n, f_in = x.shape
    f_pad = _round_up(f_in, LANE)

    # Kernel-1 node tiling: prefer large tiles (fewer per-step overheads on v5e/v6e), but
    # halve the tile if that would leave an odd grid so v7x's two TensorCores stay balanced.
    tile_n = min(tile_n, _round_up(n, 16))
    n_pad = _round_up(n, tile_n)
    grid1 = n_pad // tile_n
    if grid1 > 1 and grid1 % 2 == 1 and tile_n % 32 == 0:
        tile_n //= 2
        n_pad = _round_up(n, tile_n)
        grid1 = n_pad // tile_n

    # ----- depth 0 : F_in -> 20 (bf16 matmul inputs, f32 accumulation) ------
    xb = _pad2d(x.astype(jnp.bfloat16), n_pad, f_pad)
    idx0 = jnp.pad(neigh_idx_d0, ((0, n_pad - n), (0, 0)))   # padded rows index node 0 (< n)
    x_neigh = _gather_max(xb, idx0)                          # pre-reduced [n_pad, f_pad] bf16

    w1s = _pad2d(params["w1_self"].astype(jnp.bfloat16), f_pad, H1_PAD)
    w1n = _pad2d(params["w1_neigh"].astype(jnp.bfloat16), f_pad, H1_PAD)
    b1 = _pad2d(params["b1"], 1, H1_PAD)

    h1 = pl.pallas_call(
        functools.partial(_sage0_kernel, f_out=F_OUT1),
        out_shape=jax.ShapeDtypeStruct((n_pad, H1_PAD), jnp.bfloat16),   # bf16 writeback
        grid=(grid1,),
        in_specs=[
            pl.BlockSpec((tile_n, f_pad), lambda i: (i, 0)),
            pl.BlockSpec((tile_n, f_pad), lambda i: (i, 0)),
            pl.BlockSpec((f_pad, H1_PAD), lambda i: (0, 0)),
            pl.BlockSpec((f_pad, H1_PAD), lambda i: (0, 0)),
            pl.BlockSpec((1, H1_PAD), lambda i: (0, 0)),
        ],
        out_specs=pl.BlockSpec((tile_n, H1_PAD), lambda i: (i, 0)),
        compiler_params=_compiler_params(),
    )(xb, x_neigh, w1s, w1n, b1)                            # [n_pad, 128] bf16, lane-dense

    # ----- depth 1 (20 -> 10) fused with head (relu -> dropout -> 10 -> 7) --
    idx1 = jnp.pad(neigh_idx_d1, ((0, n_pad - n), (0, 0)))
    h1_neigh = _gather_max(h1, idx1)                        # [n_pad, 128] bf16

    # All kernel-2 operands lane-dense (padded to 128 columns with zeros).
    w2s = _pad2d(params["w2_self"].astype(jnp.bfloat16), H1_PAD, H2_PAD)
    w2n = _pad2d(params["w2_neigh"].astype(jnp.bfloat16), H1_PAD, H2_PAD)
    b2 = _pad2d(params["b2"], 1, H2_PAD)
    w3 = _pad2d(params["w3"], H2_PAD, O_PAD)                # zero rows >= 10, zero cols >= 7
    b3 = _pad2d(params["b3"], 1, O_PAD)
    # Inverted-dropout scale mask in {0, 2} (p = 0.5); generated as XLA glue so the kernel
    # needs no TPU-only PRNG primitives (runs under interpret mode too).
    drop = jax.random.bernoulli(dropout_key, 0.5, (n_pad, H2_PAD)).astype(jnp.float32) * 2.0

    # Kernel-2 working set is tiny -> run it as at most two huge node tiles (one per TC).
    tile_n2 = n_pad // 2 if (n_pad % 32 == 0 and n_pad >= 32) else n_pad
    grid2 = n_pad // tile_n2

    out = pl.pallas_call(
        functools.partial(_sage1_head_kernel, f_out=F_OUT2),
        out_shape=jax.ShapeDtypeStruct((n_pad, O_PAD), jnp.float32),
        grid=(grid2,),
        in_specs=[
            pl.BlockSpec((tile_n2, H1_PAD), lambda i: (i, 0)),
            pl.BlockSpec((tile_n2, H1_PAD), lambda i: (i, 0)),
            pl.BlockSpec((H1_PAD, H2_PAD), lambda i: (0, 0)),
            pl.BlockSpec((H1_PAD, H2_PAD), lambda i: (0, 0)),
            pl.BlockSpec((1, H2_PAD), lambda i: (0, 0)),
            pl.BlockSpec((tile_n2, H2_PAD), lambda i: (i, 0)),
            pl.BlockSpec((H2_PAD, O_PAD), lambda i: (0, 0)),
            pl.BlockSpec((1, O_PAD), lambda i: (0, 0)),
        ],
        out_specs=pl.BlockSpec((tile_n2, O_PAD), lambda i: (i, 0)),
        compiler_params=_compiler_params(),
    )(h1, h1_neigh, w2s, w2n, b2, drop, w3, b3)

    return out[:n, :F_OUT3]


if __name__ == "__main__":
    N, F_IN, K = 64, 32, 4                          # small stand-ins for (2708, 1433), 4 neighbors
    key = jax.random.PRNGKey(0)
    kx, kg0, kg1, kp, kd = jax.random.split(key, 5)

    x = jax.random.normal(kx, (N, F_IN), dtype=jnp.float32)
    # Precomputed sampled neighbor indices (sampling with replacement), one set per depth.
    neigh_idx_d0 = jax.random.randint(kg0, (N, K), 0, N, dtype=jnp.int32)
    neigh_idx_d1 = jax.random.randint(kg1, (N, K), 0, N, dtype=jnp.int32)

    params = init_params(kp, F_IN)

    out = graphsage_forward(params, x, neigh_idx_d0, neigh_idx_d1, kd)
    jax.block_until_ready(out)
    assert out.shape == (N, F_OUT3) and out.dtype == jnp.float32
    print("KERNEL_OK")
</pallas_src>

<mosaic_0001>
module attributes {stable_mosaic.version = 11 : i64} {
  func.func @_sage0_kernel(%arg0: i32, %arg1: memref<64x128xbf16, #tpu.memory_space<vmem>>, %arg2: memref<64x128xbf16, #tpu.memory_space<vmem>>, %arg3: memref<128x128xbf16, #tpu.memory_space<vmem>>, %arg4: memref<128x128xbf16, #tpu.memory_space<vmem>>, %arg5: memref<1x128xf32, #tpu.memory_space<vmem>>, %arg6: memref<64x128xbf16, #tpu.memory_space<vmem>>) attributes {dimension_semantics = [#tpu.dimension_semantics<parallel>], iteration_bounds = array<i64: 1>, scalar_prefetch = 0 : i64, scratch_operands = 0 : i64, tpu.core_type = #tpu.core_type<tc>, window_params = [{transform_indices = @transform_0, window_bounds = array<i64: 64, 128>}, {transform_indices = @transform_1, window_bounds = array<i64: 64, 128>}, {pipeline_mode = #tpu.pipeline_mode<synchronous>, transform_indices = @transform_2, window_bounds = array<i64: 128, 128>}, {pipeline_mode = #tpu.pipeline_mode<synchronous>, transform_indices = @transform_3, window_bounds = array<i64: 128, 128>}, {pipeline_mode = #tpu.pipeline_mode<synchronous>, transform_indices = @transform_4, window_bounds = array<i64: 1, 128>}, {transform_indices = @transform_5, window_bounds = array<i64: 64, 128>}]} {
    %c0 = arith.constant 0 : index
    %c0_0 = arith.constant 0 : index
    %0 = vector.load %arg1[%c0, %c0_0] : memref<64x128xbf16, #tpu.memory_space<vmem>>, vector<64x128xbf16>
    %c0_1 = arith.constant 0 : index
    %c0_2 = arith.constant 0 : index
    %1 = vector.load %arg3[%c0_1, %c0_2] : memref<128x128xbf16, #tpu.memory_space<vmem>>, vector<128x128xbf16>
    %cst = arith.constant dense<0.000000e+00> : vector<64x128xf32>
    %2 = tpu.matmul %0, %1, %cst {dimension_numbers = #tpu.dot_dimension_numbers<[1], [0], [0], [1], [0, 0, 1, 1], [], []>} : vector<64x128xbf16>, vector<128x128xbf16>, vector<64x128xf32> -> vector<64x128xf32>
    %c0_3 = arith.constant 0 : index
    %c0_4 = arith.constant 0 : index
    %3 = vector.load %arg2[%c0_3, %c0_4] : memref<64x128xbf16, #tpu.memory_space<vmem>>, vector<64x128xbf16>
    %c0_5 = arith.constant 0 : index
    %c0_6 = arith.constant 0 : index
    %4 = vector.load %arg4[%c0_5, %c0_6] : memref<128x128xbf16, #tpu.memory_space<vmem>>, vector<128x128xbf16>
    %cst_7 = arith.constant dense<0.000000e+00> : vector<64x128xf32>
    %5 = tpu.matmul %3, %4, %cst_7 {dimension_numbers = #tpu.dot_dimension_numbers<[1], [0], [0], [1], [0, 0, 1, 1], [], []>} : vector<64x128xbf16>, vector<128x128xbf16>, vector<64x128xf32> -> vector<64x128xf32>
    %6 = arith.addf %2, %5 : vector<64x128xf32>
    %c0_8 = arith.constant 0 : index
    %c0_9 = arith.constant 0 : index
    %7 = vector.load %arg5[%c0_8, %c0_9] : memref<1x128xf32, #tpu.memory_space<vmem>>, vector<1x128xf32>
    %8 = vector.broadcast %7 : vector<1x128xf32> to vector<64x128xf32>
    %9 = arith.addf %6, %8 : vector<64x128xf32>
    %cst_10 = arith.constant 0.000000e+00 : f32
    %10 = vector.broadcast %cst_10 : f32 to vector<64x128xf32>
    %11 = arith.subf %10, %9 : vector<64x128xf32>
    %12 = math.exp %11 : vector<64x128xf32>
    %cst_11 = arith.constant 1.000000e+00 : f32
    %13 = vector.broadcast %cst_11 : f32 to vector<64x128xf32>
    %14 = arith.addf %13, %12 : vector<64x128xf32>
    %cst_12 = arith.constant 1.000000e+00 : f32
    %15 = vector.broadcast %cst_12 : f32 to vector<64x128xf32>
    %16 = arith.divf %15, %14 : vector<64x128xf32>
    %17 = tpu.iota {dimensions = array<i32: 1>} : vector<64x128xi32>
    %c20_i32 = arith.constant 20 : i32
    %18 = vector.broadcast %c20_i32 : i32 to vector<64x128xi32>
    %19 = arith.cmpi slt, %17, %18 : vector<64x128xi32>
    %cst_13 = arith.constant 0.000000e+00 : f32
    %20 = vector.broadcast %cst_13 : f32 to vector<64x128xf32>
    %21 = arith.select %19, %16, %20 : vector<64x128xi1>, vector<64x128xf32>
    %22 = arith.mulf %21, %21 : vector<64x128xf32>
    %cst_14 = arith.constant dense<0.000000e+00> : vector<64xf32>
    %23 = vector.multi_reduction <add>, %22, %cst_14 [1] : vector<64x128xf32> to vector<64xf32>
    %24 = vector.shape_cast %23 : vector<64xf32> to vector<64x1xf32>
    %25 = math.rsqrt %24 : vector<64x1xf32>
    %26 = vector.broadcast %25 : vector<64x1xf32> to vector<64x128xf32>
    %27 = arith.mulf %21, %26 : vector<64x128xf32>
    %28 = arith.truncf %27 : vector<64x128xf32> to vector<64x128xbf16>
    %c0_15 = arith.constant 0 : index
    %c0_16 = arith.constant 0 : index
    %29 = vector.load %arg6[%c0_15, %c0_16] : memref<64x128xbf16, #tpu.memory_space<vmem>>, vector<64x128xbf16>
    tpu.vector_store %arg6[%c0_15, %c0_16], %28 {strides = array<i32>} : memref<64x128xbf16, #tpu.memory_space<vmem>>, vector<64x128xbf16>,
    return
  }
  func.func @transform_0(%arg0: i32) -> (i32, i32) {
    %c0_i32 = arith.constant 0 : i32
    %c0_i32_0 = arith.constant 0 : i32
    return %arg0, %c0_i32 : i32, i32
  }
  func.func @transform_1(%arg0: i32) -> (i32, i32) {
    %c0_i32 = arith.constant 0 : i32
    %c0_i32_0 = arith.constant 0 : i32
    return %arg0, %c0_i32 : i32, i32
  }
  func.func @transform_2(%arg0: i32) -> (i32, i32) {
    %c0_i32 = arith.constant 0 : i32
    %c0_i32_0 = arith.constant 0 : i32
    %c0_i32_1 = arith.constant 0 : i32
    return %c0_i32, %c0_i32_0 : i32, i32
  }
  func.func @transform_3(%arg0: i32) -> (i32, i32) {
    %c0_i32 = arith.constant 0 : i32
    %c0_i32_0 = arith.constant 0 : i32
    %c0_i32_1 = arith.constant 0 : i32
    return %c0_i32, %c0_i32_0 : i32, i32
  }
  func.func @transform_4(%arg0: i32) -> (i32, i32) {
    %c0_i32 = arith.constant 0 : i32
    %c0_i32_0 = arith.constant 0 : i32
    %c0_i32_1 = arith.constant 0 : i32
    return %c0_i32, %c0_i32_0 : i32, i32
  }
  func.func @transform_5(%arg0: i32) -> (i32, i32) {
    %c0_i32 = arith.constant 0 : i32
    %c0_i32_0 = arith.constant 0 : i32
    return %arg0, %c0_i32 : i32, i32
  }
}

</mosaic_0001>

<bundles_post_ra>
// kernel: tpu_custom_call.1
= control target key start
LH: loop header
LB: loop body
LE: loop exit
PB: predicated region body
PF: predicated region fallthrough
CT: control target
= control target key end

     0   :  { %10 = vsyncpa [#allocation3], 0  ;;  %s1050_s0 = inlined_call_operand.hbm [shape: bf16[64,128], index: 0, kind: input, shape index: {}]   ;;  %s1051_s1 = inlined_call_operand.hbm [shape: bf16[64,128], index: 1, kind: input, shape index: {}]   ;;  %s1052_s2 = inlined_call_operand.hbm [shape: bf16[128,128], index: 2, kind: input, shape index: {}]   ;;  %s1053_s3 = inlined_call_operand.hbm [shape: bf16[128,128], index: 3, kind: input, shape index: {}]   ;;  %s1054_s4 = inlined_call_operand.vmem [shape: f32[1,128], index: 4, kind: input, shape index: {}]   ;;  %s1055_s5 = inlined_call_operand.hbm [shape: bf16[64,128], index: 5, kind: output, shape index: {}]  }
   0x1   :  { %11 = vsyncpa [#allocation6], 0 }
   0x2   :  { %12 = vsyncpa [#allocation9], 0 }
   0x3   :  { %13 = vsyncpa [#allocation4], 0  ;;  %s913_s18 = smov [#allocation5]   ;;  %s914_s20 = smov [#allocation2]  }
   0x4   :  { %s31_s19 = sshll.u32 %s913_s18, 4  ;;  %s19_s21 = sshll.u32 %s914_s20, 4  ;;  %s32_s19 = int_to_ptr.vmem [resolvable:$true] %s31_s19  ;;  %s950_s21 = int_to_ptr.vmem [resolvable:$true] %s19_s21 }
   0x5   :  { %s795_s24 = scalar_lea.hbm %s1051_s1, 512 }
   0x6   :  { %p796_p0 = scmp.ne.s32.totalorder %s1051_s1, %s795_s24  ;;  %p799_p1 = scmp.lt.u32.totalorder %s795_s24, %s1051_s1 }
   0x8   :  { %p801_p2 = pnand %p799_p1, %p796_p0 }
   0xa   :  { %804 = shalt.err (!%p801_p2)
}
   0xb   :  { %s805_s29 = scalar_lea.vmem %s32_s19, 512  ;;  %p810_p4 = scmp.lt.s32.totalorder %s32_s19, %s32_s19 }
   0xc   :  { %p806_p3 = scmp.ne.s32.totalorder %s32_s19, %s805_s29  ;;  %p811_p5 = scmp.lt.s32.totalorder %s805_s29, %s805_s29 }
   0xe   :  { %p812_p6 = por %p811_p5, %p810_p4 }
  0x10   :  { %p813_p7 = pnand %p812_p6, %p806_p3 }
  0x12   :  { %816 = shalt.err (!%p813_p7)
}
  0x13   :  { %s915_s30 = smov 64   ;;  %s916_s6 = smov 4  }
  0x14   :  { %37 = dma.hbm_to_vmem [thread:$0]  %s1051_s1, 512, %s32_s19, [#allocation6], %s915_s30, %s915_s30, %s916_s6  }
  0x15   :  { %s817_s11 = scalar_lea.hbm %s1050_s0, 512 }
  0x16   :  { %p818_p8 = scmp.ne.s32.totalorder %s1050_s0, %s817_s11  ;;  %p821_p9 = scmp.lt.u32.totalorder %s817_s11, %s1050_s0 }
  0x18   :  { %p823_p10 = pnand %p821_p9, %p818_p8 }
  0x1a   :  { %826 = shalt.err (!%p823_p10)
}
  0x1b   :  { %s827_s16 = scalar_lea.vmem %s950_s21, 512  ;;  %p832_p12 = scmp.lt.s32.totalorder %s950_s21, %s950_s21 }
  0x1c   :  { %p828_p11 = scmp.ne.s32.totalorder %s950_s21, %s827_s16  ;;  %p833_p13 = scmp.lt.s32.totalorder %s827_s16, %s827_s16 }
  0x1e   :  { %p834_p0 = por %p833_p13, %p832_p12 }
  0x20   :  { %p835_p1 = pnand %p834_p0, %p828_p11 }
  0x22   :  { %838 = shalt.err (!%p835_p1)
}
  0x23   :  { %25 = dma.hbm_to_vmem [thread:$0]  %s1050_s0, 512, %s950_s21, [#allocation3], %s915_s30, %s915_s30, %s916_s6  }
  0x24   :  { %s917_s18 = smov [#allocation7]   ;;  %s918_s20 = smov [#allocation8]  }
  0x25   :  { %s43_s19 = sshll.u32 %s917_s18, 4  ;;  %s55_s22 = sshll.u32 %s918_s20, 4  ;;  %s44_s19 = int_to_ptr.vmem [resolvable:$true] %s43_s19  ;;  %s987_s22 = int_to_ptr.vmem [resolvable:$true] %s55_s22 }
  0x26   :  { %s839_s25 = scalar_lea.hbm %s1052_s2, 1024 }
  0x27   :  { %p840_p2 = scmp.ne.s32.totalorder %s1052_s2, %s839_s25  ;;  %p843_p3 = scmp.lt.u32.totalorder %s839_s25, %s1052_s2 }
  0x29   :  { %p845_p4 = pnand %p843_p3, %p840_p2 }
  0x2b   :  { %848 = shalt.err (!%p845_p4)
}
  0x2c   :  { %s849_s0 = scalar_lea.vmem %s44_s19, 1024  ;;  %p854_p6 = scmp.lt.s32.totalorder %s44_s19, %s44_s19 }
  0x2d   :  { %p850_p5 = scmp.ne.s32.totalorder %s44_s19, %s849_s0  ;;  %p855_p7 = scmp.lt.s32.totalorder %s849_s0, %s849_s0 }
  0x2f   :  { %p856_p8 = por %p855_p7, %p854_p6 }
  0x31   :  { %p857_p9 = pnand %p856_p8, %p850_p5 }
  0x33   :  { %860 = shalt.err (!%p857_p9)
}
  0x34   :  { %49 = dma.hbm_to_vmem [thread:$0]  %s1052_s2, 1024, %s44_s19, [#allocation6], %s915_s30, %s915_s30, %s916_s6  }
  0x35   :  { %s861_s10 = scalar_lea.hbm %s1053_s3, 1024 }
  0x36   :  { %p862_p10 = scmp.ne.s32.totalorder %s1053_s3, %s861_s10  ;;  %p865_p11 = scmp.lt.u32.totalorder %s861_s10, %s1053_s3 }
  0x38   :  { %p867_p12 = pnand %p865_p11, %p862_p10 }
  0x3a   :  { %870 = shalt.err (!%p867_p12)
}
  0x3b   :  { %s871_s15 = scalar_lea.vmem %s987_s22, 1024  ;;  %p876_p0 = scmp.lt.s32.totalorder %s987_s22, %s987_s22 }
  0x3c   :  { %p872_p13 = scmp.ne.s32.totalorder %s987_s22, %s871_s15  ;;  %p877_p1 = scmp.lt.s32.totalorder %s871_s15, %s871_s15 }
  0x3e   :  { %p878_p2 = por %p877_p1, %p876_p0 }
  0x40   :  { %p879_p3 = pnand %p878_p2, %p872_p13 }
  0x42   :  { %882 = shalt.err (!%p879_p3)
}
  0x43   :  { %61 = dma.hbm_to_vmem [thread:$0]  %s1053_s3, 1024, %s987_s22, [#allocation9], %s915_s30, %s915_s30, %s916_s6  }
  0x44   :  { %905 = dma.done.wait [#allocation3], 512  }
  0x45   :  { %906 = vsyncadd [#allocation3], 4294966784 }
  0x46   :  { %907 = dma.done.wait [#allocation6], 1536  }
  0x47   :  { %908 = vsyncadd [#allocation6], 4294965760 }
  0x48   :  { %909 = dma.done.wait [#allocation9], 1024  }
  0x49   :  { %910 = vsyncadd [#allocation9], 4294966272  ;;  %v723_v0 = vld [vmem:[#allocation8] sm:$0xff]   ;;  %v725_v2 = vld [vmem:[#allocation8 + $0x8] sm:$0xff]  }
  0x4a   :  { %v724_v1 = vld [vmem:[#allocation7] sm:$0xff]   ;;  %660 = vmatprep.subr.bf16.mxu1 %v723_v0  ;;  %v726_v3 = vld [vmem:[#allocation7 + $0x8] sm:$0xff]   ;;  %v727_v4 = vld [vmem:[#allocation8 + $0x10] sm:$0xff]  }
  0x4b   :  { %684 = vmatprep.subr.bf16.mxu0 %v724_v1  ;;  %661 = vmatpush3.bf16.msra.mxu1 %v723_v0  ;;  %v728_v5 = vld [vmem:[#allocation7 + $0x10] sm:$0xff]   ;;  %v729_v6 = vld [vmem:[#allocation8 + $0x18] sm:$0xff]   ;;  %v731_v8 = vld [vmem:[#allocation8 + $0x20] sm:$0xff]  }
  0x4c   :  { %685 = vmatpush3.bf16.msra.mxu0 %v724_v1  ;;  %662 = vmatprep.subr.bf16.mxu1 %v725_v2  ;;  %v730_v7 = vld [vmem:[#allocation7 + $0x18] sm:$0xff]   ;;  %v732_v9 = vld [vmem:[#allocation7 + $0x20] sm:$0xff]   ;;  %v733_v10 = vld [vmem:[#allocation8 + $0x28] sm:$0xff]  }
  0x4d   :  { %686 = vmatprep.subr.bf16.mxu0 %v726_v3  ;;  %v734_v11 = vld [vmem:[#allocation7 + $0x28] sm:$0xff]   ;;  %v739_v12 = vld [vmem:[#allocation5] sm:$0xff]   ;;  %v735_v14 = vld [vmem:[#allocation8 + $0x30] sm:$0xff]  }
  0x4e   :  { %v740_v13 = vld [vmem:[#allocation2] sm:$0xff]   ;;  %676 = vmatprep.mubr.bf16.mxu1 %v739_v12  ;;  %v736_v15 = vld [vmem:[#allocation7 + $0x30] sm:$0xff]   ;;  %v737_v16 = vld [vmem:[#allocation8 + $0x38] sm:$0xff]  }
  0x4f   :  { %663 = vmatpush3.bf16.msra.mxu1 %v725_v2  ;;  %700 = vmatprep.mubr.bf16.mxu0 %v740_v13  ;;  %v738_v17 = vld [vmem:[#allocation7 + $0x38] sm:$0xff]   ;;  %v741_v18 = vld [vmem:[#allocation5 + $0x8] sm:$0xff]   ;;  %v743_v20 = vld [vmem:[#allocation5 + $0x10] sm:$0xff]  }
  0x50   :  { %687 = vmatpush3.bf16.msra.mxu0 %v726_v3  ;;  %664 = vmatprep.subr.bf16.mxu1 %v727_v4  ;;  %v742_v19 = vld [vmem:[#allocation2 + $0x8] sm:$0xff]   ;;  %v744_v21 = vld [vmem:[#allocation2 + $0x10] sm:$0xff]   ;;  %v745_v22 = vld [vmem:[#allocation5 + $0x18] sm:$0xff]  }
  0x51   :  { %688 = vmatprep.subr.bf16.mxu0 %v728_v5  ;;  %v746_v23 = vld [vmem:[#allocation2 + $0x18] sm:$0xff]   ;;  %v596_v26 = vld [vmem:[%s1054_s4] ss:$0 sm:$0xff]  ;;  %s919_s4 = smov [#allocation10]  }
  0x52   :  { %s558_s17 = sshll.u32 %s919_s4, 4  ;;  %s559_s17 = int_to_ptr.vmem [resolvable:$true] %s558_s17 }
  0x53   :  { %665 = vmatpush3.bf16.msra.mxu1 %v727_v4  ;;  %s883_s18 = scalar_lea.vmem %s559_s17, 512  ;;  %p888_p5 = scmp.lt.s32.totalorder %s559_s17, %s559_s17 }
  0x54   :  { %689 = vmatpush3.bf16.msra.mxu0 %v728_v5  ;;  %666 = vmatprep.subr.bf16.mxu1 %v729_v6  ;;  %p884_p4 = scmp.ne.s32.totalorder %s559_s17, %s883_s18  ;;  %p889_p6 = scmp.lt.s32.totalorder %s883_s18, %s883_s18 }
  0x55   :  { %690 = vmatprep.subr.bf16.mxu0 %v730_v7 }
  0x56   :  { %p890_p7 = por %p889_p6, %p888_p5 }
  0x57   :  { %667 = vmatpush3.bf16.msra.mxu1 %v729_v6 }
  0x58   :  { %691 = vmatpush3.bf16.msra.mxu0 %v730_v7  ;;  %668 = vmatprep.subr.bf16.mxu1 %v731_v8  ;;  %p891_p8 = pnand %p890_p7, %p884_p4 }
  0x59   :  { %692 = vmatprep.subr.bf16.mxu0 %v732_v9 }
  0x5b   :  { %669 = vmatpush3.bf16.msra.mxu1 %v731_v8 }
  0x5c   :  { %693 = vmatpush3.bf16.msra.mxu0 %v732_v9  ;;  %670 = vmatprep.subr.bf16.mxu1 %v733_v10 }
  0x5d   :  { %694 = vmatprep.subr.bf16.mxu0 %v734_v11 }
  0x5f   :  { %671 = vmatpush3.bf16.msra.mxu1 %v733_v10 }
  0x60   :  { %695 = vmatpush3.bf16.msra.mxu0 %v734_v11  ;;  %672 = vmatprep.subr.bf16.mxu1 %v735_v14 }
  0x61   :  { %696 = vmatprep.subr.bf16.mxu0 %v736_v15 }
  0x63   :  { %673 = vmatpush3.bf16.msra.mxu1 %v735_v14 }
  0x64   :  { %697 = vmatpush3.bf16.msra.mxu0 %v736_v15  ;;  %674 = vmatprep.subr.bf16.mxu1 %v737_v16 }
  0x65   :  { %698 = vmatprep.subr.bf16.mxu0 %v738_v17 }
  0x67   :  { %675 = vmatpush3.bf16.msra.mxu1 %v737_v16  ;;  %v462_v16 = vlaneseq }
  0x68   :  { %699 = vmatpush3.bf16.msra.mxu0 %v738_v17 }
  0x6a   :  { %677 = vmatmul.mubr.bf16.vlgmr.msra.gmra.mrb[0].mxu1 %v741_v18  ;;  %v463_v18 = vand.u32 127, %v462_v16 }
  0x6b   :  { %701 = vmatmul.mubr.bf16.vlgmr.msra.gmra.mrb[0].mxu0 %v742_v19  ;;  %680 = vmatprep.mubr.bf16.mxu1 %v743_v20 }
  0x6c   :  { %704 = vmatprep.mubr.bf16.mxu0 %v744_v21  ;;  %vm464_vm0 = vcmp.lt.s32.totalorder %v463_v18, 20 }
  0x72   :  { %681 = vmatmul.mubr.bf16.gmra.mrb[4].mxu1 %v745_v22 }
  0x73   :  { %705 = vmatmul.mubr.bf16.gmra.mrb[4].mxu0 %v746_v23 }
 0x13d   :  { %v678_v24 = vpop.f32.mrb[0].mxu1 }
 0x13e   :  { %v702_v25 = vpop.f32.mrb[0].mxu0  ;;  %v231_v27 = vpop.f32.mrb[1].mxu1 }
 0x13f   :  { %v377_v28 = vadd.f32 %v702_v25, %v678_v24  ;;  %v368_v29 = vpop.f32.mrb[1].mxu0  ;;  %v679_v30 = vpop.f32.mrb[2].mxu1 }
 0x140   :  { %v369_v31 = vadd.f32 %v368_v29, %v231_v27  ;;  %v703_v32 = vpop.f32.mrb[2].mxu0  ;;  %v234_v33 = vpop.f32.mrb[3].mxu1 }
 0x141   :  { %v408_v34 = vadd.f32 %v596_v26, %v377_v28  ;;  %v380_v35 = vadd.f32 %v703_v32, %v679_v30  ;;  %v371_v36 = vpop.f32.mrb[3].mxu0 }
 0x142   :  { %v406_v37 = vadd.f32 %v596_v26, %v369_v31  ;;  %v372_v38 = vadd.f32 %v371_v36, %v234_v33 }
 0x143   :  { %v416_v39 = vsub.f32 0.0, %v408_v34  ;;  %v409_v40 = vadd.f32 %v596_v26, %v380_v35 }
 0x144   :  { %v414_v41 = vsub.f32 0.0, %v406_v37  ;;  %v407_v42 = vadd.f32 %v596_v26, %v372_v38 }
 0x145   :  { %v426_v43 = vmul.f32 1.442695, %v416_v39  ;;  %v417_v44 = vsub.f32 0.0, %v409_v40  ;;  %v682_v45 = vpop.f32.mrb[4].mxu1 }
 0x146   :  { %v422_v46 = vmul.f32 1.442695, %v414_v41  ;;  %v415_v47 = vsub.f32 0.0, %v407_v42  ;;  %v706_v48 = vpop.f32.mrb[4].mxu0  ;;  %v247_v49 = vpop.f32.mrb[5].mxu1 }
 0x147   :  { %747 = vpow2.f32 %v426_v43  ;;  %v428_v50 = vmul.f32 1.442695, %v417_v44  ;;  %v393_v51 = vadd.f32 %v706_v48, %v682_v45  ;;  %v384_v52 = vpop.f32.mrb[5].mxu0  ;;  %v683_v53 = vpop.f32.mrb[6].mxu1 }
 0x148   :  { %749 = vpow2.f32 %v422_v46  ;;  %v424_v54 = vmul.f32 1.442695, %v415_v47  ;;  %v385_v55 = vadd.f32 %v384_v52, %v247_v49  ;;  %v707_v56 = vpop.f32.mrb[6].mxu0  ;;  %v250_v57 = vpop.f32.mrb[7].mxu1 }
 0x149   :  { %751 = vpow2.f32 %v428_v50  ;;  %v412_v58 = vadd.f32 %v596_v26, %v393_v51  ;;  %v396_v59 = vadd.f32 %v707_v56, %v683_v53  ;;  %v387_v60 = vpop.f32.mrb[7].mxu0 }
 0x14a   :  { %753 = vpow2.f32 %v424_v54  ;;  %v410_v61 = vadd.f32 %v596_v26, %v385_v55  ;;  %v388_v62 = vadd.f32 %v387_v60, %v250_v57 }
 0x14b   :  { %v420_v63 = vsub.f32 0.0, %v412_v58  ;;  %v413_v0 = vadd.f32 %v596_v26, %v396_v59 }
 0x14c   :  { %v418_v1 = vsub.f32 0.0, %v410_v61  ;;  %v411_v2 = vadd.f32 %v596_v26, %v388_v62 }
 0x14d   :  { %v434_v3 = vmul.f32 1.442695, %v420_v63  ;;  %v421_v4 = vsub.f32 0.0, %v413_v0 }
 0x14e   :  { %v430_v5 = vmul.f32 1.442695, %v418_v1  ;;  %v419_v6 = vsub.f32 0.0, %v411_v2 }
 0x14f   :  { %755 = vpow2.f32 %v434_v3  ;;  %v436_v7 = vmul.f32 1.442695, %v421_v4 }
 0x150   :  { %757 = vpow2.f32 %v430_v5  ;;  %v432_v8 = vmul.f32 1.442695, %v419_v6 }
 0x151   :  { %v748_v9 = vpop.eup %747  ;;  %759 = vpow2.f32 %v436_v7 }
 0x152   :  { %v750_v10 = vpop.eup %749  ;;  %v440_v11 = vadd.f32 1.0, %v748_v9  ;;  %761 = vpow2.f32 %v432_v8 }
 0x153   :  { %v752_v12 = vpop.eup %751  ;;  %v438_v13 = vadd.f32 1.0, %v750_v10 }
 0x154   :  { %v754_v14 = vpop.eup %753  ;;  %763 = vrcp.f32 %v440_v11  ;;  %v441_v15 = vadd.f32 1.0, %v752_v12 }
 0x155   :  { %765 = vrcp.f32 %v438_v13  ;;  %v439_v17 = vadd.f32 1.0, %v754_v14 }
 0x156   :  { %767 = vrcp.f32 %v441_v15 }
 0x157   :  { %769 = vrcp.f32 %v439_v17 }
 0x159   :  { %v756_v19 = vpop.eup %755 }
 0x15a   :  { %v758_v20 = vpop.eup %757  ;;  %v444_v21 = vadd.f32 1.0, %v756_v19 }
 0x15b   :  { %v760_v22 = vpop.eup %759  ;;  %v442_v23 = vadd.f32 1.0, %v758_v20 }
 0x15c   :  { %v762_v24 = vpop.eup %761  ;;  %771 = vrcp.f32 %v444_v21  ;;  %v445_v25 = vadd.f32 1.0, %v760_v22 }
 0x15d   :  { %773 = vrcp.f32 %v442_v23  ;;  %v443_v26 = vadd.f32 1.0, %v762_v24 }
 0x15e   :  { %v764_v27 = vpop.eup %763  ;;  %775 = vrcp.f32 %v445_v25 }
 0x15f   :  { %v766_v28 = vpop.eup %765  ;;  %777 = vrcp.f32 %v443_v26  ;;  %v467_v29 = vsel %vm464_vm0, %v764_v27, 0.0 }
 0x160   :  { %v768_v30 = vpop.eup %767  ;;  %v475_v31 = vmul.f32 %v467_v29, %v467_v29  ;;  %v465_v32 = vsel %vm464_vm0, %v766_v28, 0.0 }
 0x161   :  { %v770_v33 = vpop.eup %769  ;;  %v473_v34 = vmul.f32 %v465_v32, %v465_v32  ;;  %v468_v35 = vsel %vm464_vm0, %v768_v30, 0.0 }
 0x162   :  { %485 = vadd.xlane.f32.xlu1 %v475_v31  ;;  %v466_v36 = vsel %vm464_vm0, %v770_v33, 0.0  ;;  %v476_v37 = vmul.f32 %v468_v35, %v468_v35 }
 0x163   :  { %481 = vadd.xlane.f32.xlu0 %v473_v34  ;;  %v474_v38 = vmul.f32 %v466_v36, %v466_v36 }
 0x166   :  { %v772_v39 = vpop.eup %771  ;;  %487 = vadd.xlane.f32.xlu1 %v476_v37 }
 0x167   :  { %v774_v40 = vpop.eup %773  ;;  %483 = vadd.xlane.f32.xlu0 %v474_v38  ;;  %v471_v46 = vsel %vm464_vm0, %v772_v39, 0.0 }
 0x168   :  { %v776_v41 = vpop.eup %775  ;;  %v469_v42 = vsel %vm464_vm0, %v774_v40, 0.0  ;;  %v479_v49 = vmul.f32 %v471_v46, %v471_v46 }
 0x169   :  { %v778_v43 = vpop.eup %777  ;;  %v477_v44 = vmul.f32 %v469_v42, %v469_v42  ;;  %v472_v48 = vsel %vm464_vm0, %v776_v41, 0.0 }
 0x16a   :  { %v470_v45 = vsel %vm464_vm0, %v778_v43, 0.0  ;;  %v480_v50 = vmul.f32 %v472_v48, %v472_v48 }
 0x16b   :  { %489 = vadd.xlane.f32.xlu0 %v477_v44  ;;  %v478_v47 = vmul.f32 %v470_v45, %v470_v45 }
 0x16d   :  { %491 = vadd.xlane.f32.xlu1 %v478_v47 }
 0x16f   :  { %493 = vadd.xlane.f32.xlu0 %v479_v49 }
 0x171   :  { %495 = vadd.xlane.f32.xlu1 %v480_v50 }
 0x1ef   :  { %v486_v51 = vpop.xlane.xlu1 %485 }
 0x1f0   :  { %v482_v52 = vpop.xlane.xlu0 %481  ;;  %779 = vrsqrt.f32 %v486_v51 }
 0x1f1   :  { %781 = vrsqrt.f32 %v482_v52 }
 0x1f3   :  { %v488_v53 = vpop.xlane.xlu1 %487 }
 0x1f4   :  { %783 = vrsqrt.f32 %v488_v53  ;;  %v484_v54 = vpop.xlane.xlu0 %483 }
 0x1f5   :  { %785 = vrsqrt.f32 %v484_v54 }
 0x1f8   :  { %v490_v55 = vpop.xlane.xlu0 %489 }
 0x1f9   :  { %787 = vrsqrt.f32 %v490_v55 }
 0x1fa   :  { %v492_v56 = vpop.xlane.xlu1 %491  ;;  %v780_v57 = vpop.eup %779 }
 0x1fb   :  { %789 = vrsqrt.f32 %v492_v56  ;;  %v782_v59 = vpop.eup %781  ;;  %v507_v63 = vmul.f32 %v780_v57, %v467_v29 }
 0x1fc   :  { %v494_v58 = vpop.xlane.xlu0 %493  ;;  %v505_v1 = vmul.f32 %v782_v59, %v465_v32 }
 0x1fd   :  { %791 = vrsqrt.f32 %v494_v58 }
 0x1fe   :  { %v784_v60 = vpop.eup %783  ;;  %v496_v61 = vpop.xlane.xlu1 %495 }
 0x1ff   :  { %v786_v62 = vpop.eup %785  ;;  %v508_v0 = vmul.f32 %v784_v60, %v468_v35  ;;  %793 = vrsqrt.f32 %v496_v61 }
 0x200   :  { %v506_v2 = vmul.f32 %v786_v62, %v466_v36 }
 0x201   :  { %v621_v3 = vpack.c.bf16 %v508_v0, %v507_v63 }
 0x202   :  { %v616_v4 = vpack.c.bf16 %v506_v2, %v505_v1 }
 0x203   :  { %v788_v5 = vpop.eup %787  ;;  %633 = vst [vmem:[#allocation10 + $0x8] sm:$0xff] %v621_v3  }
 0x204   :  { %617 = vst [vmem:[#allocation10] sm:$0xff] %v616_v4   ;;  %v509_v7 = vmul.f32 %v788_v5, %v469_v42 }
 0x205   :  { %v790_v6 = vpop.eup %789 }
 0x206   :  { %v510_v8 = vmul.f32 %v790_v6, %v470_v45 }
 0x207   :  { %v792_v9 = vpop.eup %791 }
 0x208   :  { %v626_v10 = vpack.c.bf16 %v510_v8, %v509_v7  ;;  %v511_v12 = vmul.f32 %v792_v9, %v471_v46 }
 0x209   :  { %v794_v11 = vpop.eup %793 }
 0x20a   :  { %v512_v13 = vmul.f32 %v794_v11, %v472_v48  ;;  %634 = vst [vmem:[#allocation10 + $0x10] sm:$0xff] %v626_v10  }
 0x20c   :  { %v631_v14 = vpack.c.bf16 %v512_v13, %v511_v12 }
 0x20e   :  { %635 = vst [vmem:[#allocation10 + $0x18] sm:$0xff] %v631_v14  }
 0x20f   :  { %894 = shalt.err (!%p891_p8)
}
 0x210   :  { %s895_s22 = scalar_lea.hbm %s1055_s5, 512 }
 0x211   :  { %p896_p9 = scmp.ne.s32.totalorder %s1055_s5, %s895_s22  ;;  %p899_p10 = scmp.lt.u32.totalorder %s895_s22, %s1055_s5 }
 0x213   :  { %p901_p11 = pnand %p899_p10, %p896_p9 }
 0x215   :  { %904 = shalt.err (!%p901_p11)
}
 0x216   :  { %564 = dma.vmem_to_hbm [thread:$0]  %s559_s17, 512, %s1055_s5, [#allocation4], %s915_s30, %s915_s30, %s916_s6  }
 0x217   :  { %911 = dma.done.wait [#allocation4], 512  }
 0x218   :  { %912 = vsyncadd [#allocation4], 4294966784 }
 0x219   :  { %568 = vsyncpa [#allocation3], 1 }
 0x21a   :  { %569 = vsyncpa [#allocation6], 1 }
 0x21b   :  { %570 = vsyncpa [#allocation9], 1 }
 0x21c   :  { %571 = vsyncpa [#allocation4], 1 }

</bundles_post_ra>
